<compile_context>
chip_gen: v7x
topology: tpu7x:2x2x1
jax: 0.10.0
libtpu: 0.0.40
codegen_flags: <defaults>
</compile_context>

<pallas_src>
import jax
import jax.numpy as jnp
from jax.experimental import pallas as pl
from jax.experimental.pallas import tpu as pltpu


def _round_up(x, m):
    return ((x + m - 1) // m) * m


def _round_down(x, m):
    return (x // m) * m


# -----------------------------------------------------------------------------
# Path A: tiny channel counts (e.g. C_in=4, C_out=3), HW % 128 == 0.
# -----------------------------------------------------------------------------
def _outconv_vpu_kernel(w_ref, b_ref, x_ref, o_ref):
    # w_ref: (C_out, C_in) f32 SMEM   (resident, scalar reads)
    # b_ref: (C_out,)      f32 SMEM
    # x_ref: (C_in, S, 128)  f32 VMEM (sublane- and lane-dense pixel slabs)
    # o_ref: (C_out, S, 128) f32 VMEM
    c_out = o_ref.shape[0]
    c_in = x_ref.shape[0]
    slab_shape = x_ref.shape[1:]
    for o in range(c_out):
        # Bias folded into the accumulator init; only this acc is live.
        acc = jnp.full(slab_shape, b_ref[o], dtype=jnp.float32)
        for c in range(c_in):
            acc = acc + w_ref[o, c] * x_ref[c]      # full-vreg VPU FMA
        o_ref[o] = acc.astype(o_ref.dtype)          # direct per-channel store


def _outconv_vpu(x_flat, w_mat, b_vec, pixel_tile, vmem_budget_bytes):
    N, C_in, HW = x_flat.shape
    C_out = w_mat.shape[0]
    S_total = HW // 128                         # caller guarantees HW % 128 == 0
    x4 = x_flat.reshape(N, C_in, S_total, 128)  # free reshape (no data movement)

    # Per-step HBM bytes = (C_in + C_out) * s_blk * 128 * 4.  Aim for >= ~1 MiB
    # per step but keep the double-buffered in+out footprint under the budget.
    bytes_per_slab = (C_in + C_out) * 128 * 4
    s_cap = max(8, _round_down(vmem_budget_bytes // (2 * bytes_per_slab), 8))
    s_blk = max(8, _round_down(max(pixel_tile, 1024) // 128, 8))
    s_blk = min(s_blk, s_cap)
    if s_blk >= S_total:
        s_blk = S_total                         # single full block (any size ok)

    grid = (N, pl.cdiv(S_total, s_blk))         # ragged last block -> masked

    out4 = pl.pallas_call(
        _outconv_vpu_kernel,
        out_shape=jax.ShapeDtypeStruct((N, C_out, S_total, 128), x_flat.dtype),
        grid_spec=pltpu.PrefetchScalarGridSpec(
            num_scalar_prefetch=0,
            grid=grid,
            in_specs=[
                # Weight & bias stay resident in SMEM for the whole grid.
                pl.BlockSpec(memory_space=pltpu.MemorySpace.SMEM),
                pl.BlockSpec(memory_space=pltpu.MemorySpace.SMEM),
                # Dense pixel slabs; batch dim squeezed.
                pl.BlockSpec((None, C_in, s_blk, 128),
                             lambda n, p: (n, 0, p, 0)),
            ],
            out_specs=pl.BlockSpec((None, C_out, s_blk, 128),
                                   lambda n, p: (n, 0, p, 0)),
        ),
        compiler_params=pltpu.CompilerParams(
            dimension_semantics=("parallel", "parallel")),
    )(w_mat, b_vec, x4)
    return out4.reshape(N, C_out, HW)


# -----------------------------------------------------------------------------
# Path B: larger channel counts (MXU), also the general fallback for any HW.
# -----------------------------------------------------------------------------
def _outconv_mxu_kernel(w_ref, b_ref, x_ref, o_ref):
    # w_ref: (C_out, C_in) f32 VMEM, b_ref: (C_out, 1) f32 VMEM
    # x_ref: (C_in, TP)    f32 VMEM, o_ref: (C_out, TP) f32 VMEM
    y = jnp.dot(w_ref[...], x_ref[...], preferred_element_type=jnp.float32)
    o_ref[...] = (y + b_ref[...]).astype(o_ref.dtype)


def _outconv_mxu(x_flat, w_mat, b_vec, pixel_tile, vmem_budget_bytes):
    N, C_in, HW = x_flat.shape
    C_out = w_mat.shape[0]

    bytes_per_pixel = (C_in + C_out) * 4
    cap = max(128, _round_down(vmem_budget_bytes // (2 * bytes_per_pixel), 128))
    tp = max(128, _round_down(pixel_tile, 128))
    tp = min(tp, cap)
    tp = min(tp, _round_up(HW, 128))            # never wider than one image row

    grid = (N, pl.cdiv(HW, tp))                 # ragged last block -> masked
    b_col = b_vec.reshape(C_out, 1)

    out = pl.pallas_call(
        _outconv_mxu_kernel,
        out_shape=jax.ShapeDtypeStruct((N, C_out, HW), x_flat.dtype),
        grid_spec=pltpu.PrefetchScalarGridSpec(
            num_scalar_prefetch=0,
            grid=grid,
            in_specs=[
                # Constant block index -> weight/bias DMA'd to VMEM once.
                pl.BlockSpec((C_out, C_in), lambda n, p: (0, 0)),
                pl.BlockSpec((C_out, 1), lambda n, p: (0, 0)),
                pl.BlockSpec((None, C_in, tp), lambda n, p: (n, 0, p)),
            ],
            out_specs=pl.BlockSpec((None, C_out, tp), lambda n, p: (n, 0, p)),
        ),
        compiler_params=pltpu.CompilerParams(
            dimension_semantics=("parallel", "parallel")),
    )(w_mat, b_col, x_flat)
    return out


def outconv_pallas(x_nchw, weight, bias, *, pixel_tile=65536,
                   vmem_budget_bytes=10 * 1024 * 1024):
    """1x1 conv (outconv.forward).

    x_nchw: (N, C_in, H, W) float32
    weight: (C_out, C_in, 1, 1) float32   (PyTorch Conv2d layout)
    bias:   (C_out,) float32
    returns (N, C_out, H, W) float32
    """
    N, C_in, H, W = x_nchw.shape
    C_out = weight.shape[0]
    HW = H * W

    # Free reshapes (NCHW -> (N, C, H*W)): no transpose, no data movement.
    x_flat = x_nchw.reshape(N, C_in, HW)
    w_mat = weight.reshape(C_out, C_in)
    b_vec = bias.reshape(C_out)

    if C_in * C_out <= 64 and HW % 128 == 0:
        out_flat = _outconv_vpu(x_flat, w_mat, b_vec,
                                pixel_tile, vmem_budget_bytes)
    else:
        out_flat = _outconv_mxu(x_flat, w_mat, b_vec,
                                pixel_tile, vmem_budget_bytes)

    return out_flat.reshape(N, C_out, H, W)


def _reference(x_nchw, weight, bias):
    w = weight.reshape(weight.shape[0], weight.shape[1])  # (C_out, C_in)
    y = jnp.einsum("nchw,oc->nohw", x_nchw, w)
    return y + bias[None, :, None, None]


def _make_params(key, c_in, c_out):
    kw, kb = jax.random.split(key)
    bound = 1.0 / (c_in ** 0.5)     # nn.Conv2d default init range
    weight = jax.random.uniform(kw, (c_out, c_in, 1, 1),
                                minval=-bound, maxval=bound, dtype=jnp.float32)
    bias = jax.random.uniform(kb, (c_out,),
                              minval=-bound, maxval=bound, dtype=jnp.float32)
    return weight, bias


if __name__ == "__main__":
    key = jax.random.PRNGKey(0)
    k1, k2, k3, k4 = jax.random.split(key, 4)

    # Case 1: module-sized shapes (batch=2, in_ch=4, out_ch=3, 16x16) -> VPU path.
    N, C_in, C_out, H, W = 2, 4, 3, 16, 16
    x1 = jax.random.normal(k1, (N, C_in, H, W), dtype=jnp.float32)
    w1, b1 = _make_params(k2, C_in, C_out)
    out1 = jax.block_until_ready(outconv_pallas(x1, w1, b1))
    ref1 = _reference(x1, w1, b1)
    assert out1.shape == (N, C_out, H, W)
    assert jnp.allclose(out1, ref1, atol=1e-5, rtol=1e-5)

    # Case 2: larger channels + HW not a multiple of 128 -> MXU / ragged path.
    N2, C_in2, C_out2, H2, W2 = 2, 32, 16, 12, 12
    x2 = jax.random.normal(k3, (N2, C_in2, H2, W2), dtype=jnp.float32)
    w2, b2 = _make_params(k4, C_in2, C_out2)
    out2 = jax.block_until_ready(outconv_pallas(x2, w2, b2))
    ref2 = _reference(x2, w2, b2)
    assert out2.shape == (N2, C_out2, H2, W2)
    assert jnp.allclose(out2, ref2, atol=1e-4, rtol=1e-4)

    print("KERNEL_OK")
</pallas_src>

<mosaic_0001>
module attributes {stable_mosaic.version = 11 : i64} {
  func.func @_outconv_vpu_kernel(%arg0: i32, %arg1: i32, %arg2: memref<3x4xf32, #tpu.memory_space<smem>>, %arg3: memref<3xf32, #tpu.memory_space<smem>>, %arg4: memref<1x4x2x128xf32, #tpu.memory_space<vmem>>, %arg5: memref<1x3x2x128xf32, #tpu.memory_space<vmem>>) attributes {dimension_semantics = [#tpu.dimension_semantics<parallel>, #tpu.dimension_semantics<parallel>], iteration_bounds = array<i64: 2, 1>, scalar_prefetch = 0 : i64, scratch_operands = 0 : i64, tpu.core_type = #tpu.core_type<tc>, window_params = [{transform_indices = @transform_0, window_bounds = array<i64: 3, 4>}, {transform_indices = @transform_1, window_bounds = array<i64: 3>}, {transform_indices = @transform_2, window_bounds = array<i64: 1, 4, 2, 128>}, {transform_indices = @transform_3, window_bounds = array<i64: 1, 3, 2, 128>}]} {
    %c0 = arith.constant 0 : index
    %0 = memref.load %arg3[%c0] : memref<3xf32, #tpu.memory_space<smem>>
    %1 = vector.broadcast %0 : f32 to vector<2x128xf32>
    %c0_0 = arith.constant 0 : index
    %c0_1 = arith.constant 0 : index
    %2 = memref.load %arg2[%c0_0, %c0_1] : memref<3x4xf32, #tpu.memory_space<smem>>
    %c0_2 = arith.constant 0 : index
    %c0_3 = arith.constant 0 : index
    %c0_4 = arith.constant 0 : index
    %c0_5 = arith.constant 0 : index
    %3 = vector.load %arg4[%c0_2, %c0_3, %c0_4, %c0_5] : memref<1x4x2x128xf32, #tpu.memory_space<vmem>>, vector<1x1x2x128xf32>
    %4 = vector.shape_cast %3 : vector<1x1x2x128xf32> to vector<2x128xf32>
    %5 = vector.broadcast %2 : f32 to vector<2x128xf32>
    %6 = arith.mulf %5, %4 : vector<2x128xf32>
    %7 = arith.addf %1, %6 : vector<2x128xf32>
    %c0_6 = arith.constant 0 : index
    %c1 = arith.constant 1 : index
    %8 = memref.load %arg2[%c0_6, %c1] : memref<3x4xf32, #tpu.memory_space<smem>>
    %c0_7 = arith.constant 0 : index
    %c1_8 = arith.constant 1 : index
    %c0_9 = arith.constant 0 : index
    %c0_10 = arith.constant 0 : index
    %9 = vector.load %arg4[%c0_7, %c1_8, %c0_9, %c0_10] : memref<1x4x2x128xf32, #tpu.memory_space<vmem>>, vector<1x1x2x128xf32>
    %10 = vector.shape_cast %9 : vector<1x1x2x128xf32> to vector<2x128xf32>
    %11 = vector.broadcast %8 : f32 to vector<2x128xf32>
    %12 = arith.mulf %11, %10 : vector<2x128xf32>
    %13 = arith.addf %7, %12 : vector<2x128xf32>
    %c0_11 = arith.constant 0 : index
    %c2 = arith.constant 2 : index
    %14 = memref.load %arg2[%c0_11, %c2] : memref<3x4xf32, #tpu.memory_space<smem>>
    %c0_12 = arith.constant 0 : index
    %c2_13 = arith.constant 2 : index
    %c0_14 = arith.constant 0 : index
    %c0_15 = arith.constant 0 : index
    %15 = vector.load %arg4[%c0_12, %c2_13, %c0_14, %c0_15] : memref<1x4x2x128xf32, #tpu.memory_space<vmem>>, vector<1x1x2x128xf32>
    %16 = vector.shape_cast %15 : vector<1x1x2x128xf32> to vector<2x128xf32>
    %17 = vector.broadcast %14 : f32 to vector<2x128xf32>
    %18 = arith.mulf %17, %16 : vector<2x128xf32>
    %19 = arith.addf %13, %18 : vector<2x128xf32>
    %c0_16 = arith.constant 0 : index
    %c3 = arith.constant 3 : index
    %20 = memref.load %arg2[%c0_16, %c3] : memref<3x4xf32, #tpu.memory_space<smem>>
    %c0_17 = arith.constant 0 : index
    %c3_18 = arith.constant 3 : index
    %c0_19 = arith.constant 0 : index
    %c0_20 = arith.constant 0 : index
    %21 = vector.load %arg4[%c0_17, %c3_18, %c0_19, %c0_20] : memref<1x4x2x128xf32, #tpu.memory_space<vmem>>, vector<1x1x2x128xf32>
    %22 = vector.shape_cast %21 : vector<1x1x2x128xf32> to vector<2x128xf32>
    %23 = vector.broadcast %20 : f32 to vector<2x128xf32>
    %24 = arith.mulf %23, %22 : vector<2x128xf32>
    %25 = arith.addf %19, %24 : vector<2x128xf32>
    %c0_21 = arith.constant 0 : index
    %c0_22 = arith.constant 0 : index
    %c0_23 = arith.constant 0 : index
    %c0_24 = arith.constant 0 : index
    %26 = vector.load %arg5[%c0_21, %c0_22, %c0_23, %c0_24] : memref<1x3x2x128xf32, #tpu.memory_space<vmem>>, vector<1x1x2x128xf32>
    %27 = vector.shape_cast %26 : vector<1x1x2x128xf32> to vector<2x128xf32>
    %28 = vector.shape_cast %25 : vector<2x128xf32> to vector<1x1x2x128xf32>
    tpu.vector_store %arg5[%c0_21, %c0_22, %c0_23, %c0_24], %28 {strides = array<i32>} : memref<1x3x2x128xf32, #tpu.memory_space<vmem>>, vector<1x1x2x128xf32>,
    %c1_25 = arith.constant 1 : index
    %29 = memref.load %arg3[%c1_25] : memref<3xf32, #tpu.memory_space<smem>>
    %30 = vector.broadcast %29 : f32 to vector<2x128xf32>
    %c1_26 = arith.constant 1 : index
    %c0_27 = arith.constant 0 : index
    %31 = memref.load %arg2[%c1_26, %c0_27] : memref<3x4xf32, #tpu.memory_space<smem>>
    %c0_28 = arith.constant 0 : index
    %c0_29 = arith.constant 0 : index
    %c0_30 = arith.constant 0 : index
    %c0_31 = arith.constant 0 : index
    %32 = vector.load %arg4[%c0_28, %c0_29, %c0_30, %c0_31] : memref<1x4x2x128xf32, #tpu.memory_space<vmem>>, vector<1x1x2x128xf32>
    %33 = vector.shape_cast %32 : vector<1x1x2x128xf32> to vector<2x128xf32>
    %34 = vector.broadcast %31 : f32 to vector<2x128xf32>
    %35 = arith.mulf %34, %33 : vector<2x128xf32>
    %36 = arith.addf %30, %35 : vector<2x128xf32>
    %c1_32 = arith.constant 1 : index
    %c1_33 = arith.constant 1 : index
    %37 = memref.load %arg2[%c1_32, %c1_33] : memref<3x4xf32, #tpu.memory_space<smem>>
    %c0_34 = arith.constant 0 : index
    %c1_35 = arith.constant 1 : index
    %c0_36 = arith.constant 0 : index
    %c0_37 = arith.constant 0 : index
    %38 = vector.load %arg4[%c0_34, %c1_35, %c0_36, %c0_37] : memref<1x4x2x128xf32, #tpu.memory_space<vmem>>, vector<1x1x2x128xf32>
    %39 = vector.shape_cast %38 : vector<1x1x2x128xf32> to vector<2x128xf32>
    %40 = vector.broadcast %37 : f32 to vector<2x128xf32>
    %41 = arith.mulf %40, %39 : vector<2x128xf32>
    %42 = arith.addf %36, %41 : vector<2x128xf32>
    %c1_38 = arith.constant 1 : index
    %c2_39 = arith.constant 2 : index
    %43 = memref.load %arg2[%c1_38, %c2_39] : memref<3x4xf32, #tpu.memory_space<smem>>
    %c0_40 = arith.constant 0 : index
    %c2_41 = arith.constant 2 : index
    %c0_42 = arith.constant 0 : index
    %c0_43 = arith.constant 0 : index
    %44 = vector.load %arg4[%c0_40, %c2_41, %c0_42, %c0_43] : memref<1x4x2x128xf32, #tpu.memory_space<vmem>>, vector<1x1x2x128xf32>
    %45 = vector.shape_cast %44 : vector<1x1x2x128xf32> to vector<2x128xf32>
    %46 = vector.broadcast %43 : f32 to vector<2x128xf32>
    %47 = arith.mulf %46, %45 : vector<2x128xf32>
    %48 = arith.addf %42, %47 : vector<2x128xf32>
    %c1_44 = arith.constant 1 : index
    %c3_45 = arith.constant 3 : index
    %49 = memref.load %arg2[%c1_44, %c3_45] : memref<3x4xf32, #tpu.memory_space<smem>>
    %c0_46 = arith.constant 0 : index
    %c3_47 = arith.constant 3 : index
    %c0_48 = arith.constant 0 : index
    %c0_49 = arith.constant 0 : index
    %50 = vector.load %arg4[%c0_46, %c3_47, %c0_48, %c0_49] : memref<1x4x2x128xf32, #tpu.memory_space<vmem>>, vector<1x1x2x128xf32>
    %51 = vector.shape_cast %50 : vector<1x1x2x128xf32> to vector<2x128xf32>
    %52 = vector.broadcast %49 : f32 to vector<2x128xf32>
    %53 = arith.mulf %52, %51 : vector<2x128xf32>
    %54 = arith.addf %48, %53 : vector<2x128xf32>
    %c0_50 = arith.constant 0 : index
    %c1_51 = arith.constant 1 : index
    %c0_52 = arith.constant 0 : index
    %c0_53 = arith.constant 0 : index
    %55 = vector.load %arg5[%c0_50, %c1_51, %c0_52, %c0_53] : memref<1x3x2x128xf32, #tpu.memory_space<vmem>>, vector<1x1x2x128xf32>
    %56 = vector.shape_cast %55 : vector<1x1x2x128xf32> to vector<2x128xf32>
    %57 = vector.shape_cast %54 : vector<2x128xf32> to vector<1x1x2x128xf32>
    tpu.vector_store %arg5[%c0_50, %c1_51, %c0_52, %c0_53], %57 {strides = array<i32>} : memref<1x3x2x128xf32, #tpu.memory_space<vmem>>, vector<1x1x2x128xf32>,
    %c2_54 = arith.constant 2 : index
    %58 = memref.load %arg3[%c2_54] : memref<3xf32, #tpu.memory_space<smem>>
    %59 = vector.broadcast %58 : f32 to vector<2x128xf32>
    %c2_55 = arith.constant 2 : index
    %c0_56 = arith.constant 0 : index
    %60 = memref.load %arg2[%c2_55, %c0_56] : memref<3x4xf32, #tpu.memory_space<smem>>
    %c0_57 = arith.constant 0 : index
    %c0_58 = arith.constant 0 : index
    %c0_59 = arith.constant 0 : index
    %c0_60 = arith.constant 0 : index
    %61 = vector.load %arg4[%c0_57, %c0_58, %c0_59, %c0_60] : memref<1x4x2x128xf32, #tpu.memory_space<vmem>>, vector<1x1x2x128xf32>
    %62 = vector.shape_cast %61 : vector<1x1x2x128xf32> to vector<2x128xf32>
    %63 = vector.broadcast %60 : f32 to vector<2x128xf32>
    %64 = arith.mulf %63, %62 : vector<2x128xf32>
    %65 = arith.addf %59, %64 : vector<2x128xf32>
    %c2_61 = arith.constant 2 : index
    %c1_62 = arith.constant 1 : index
    %66 = memref.load %arg2[%c2_61, %c1_62] : memref<3x4xf32, #tpu.memory_space<smem>>
    %c0_63 = arith.constant 0 : index
    %c1_64 = arith.constant 1 : index
    %c0_65 = arith.constant 0 : index
    %c0_66 = arith.constant 0 : index
    %67 = vector.load %arg4[%c0_63, %c1_64, %c0_65, %c0_66] : memref<1x4x2x128xf32, #tpu.memory_space<vmem>>, vector<1x1x2x128xf32>
    %68 = vector.shape_cast %67 : vector<1x1x2x128xf32> to vector<2x128xf32>
    %69 = vector.broadcast %66 : f32 to vector<2x128xf32>
    %70 = arith.mulf %69, %68 : vector<2x128xf32>
    %71 = arith.addf %65, %70 : vector<2x128xf32>
    %c2_67 = arith.constant 2 : index
    %c2_68 = arith.constant 2 : index
    %72 = memref.load %arg2[%c2_67, %c2_68] : memref<3x4xf32, #tpu.memory_space<smem>>
    %c0_69 = arith.constant 0 : index
    %c2_70 = arith.constant 2 : index
    %c0_71 = arith.constant 0 : index
    %c0_72 = arith.constant 0 : index
    %73 = vector.load %arg4[%c0_69, %c2_70, %c0_71, %c0_72] : memref<1x4x2x128xf32, #tpu.memory_space<vmem>>, vector<1x1x2x128xf32>
    %74 = vector.shape_cast %73 : vector<1x1x2x128xf32> to vector<2x128xf32>
    %75 = vector.broadcast %72 : f32 to vector<2x128xf32>
    %76 = arith.mulf %75, %74 : vector<2x128xf32>
    %77 = arith.addf %71, %76 : vector<2x128xf32>
    %c2_73 = arith.constant 2 : index
    %c3_74 = arith.constant 3 : index
    %78 = memref.load %arg2[%c2_73, %c3_74] : memref<3x4xf32, #tpu.memory_space<smem>>
    %c0_75 = arith.constant 0 : index
    %c3_76 = arith.constant 3 : index
    %c0_77 = arith.constant 0 : index
    %c0_78 = arith.constant 0 : index
    %79 = vector.load %arg4[%c0_75, %c3_76, %c0_77, %c0_78] : memref<1x4x2x128xf32, #tpu.memory_space<vmem>>, vector<1x1x2x128xf32>
    %80 = vector.shape_cast %79 : vector<1x1x2x128xf32> to vector<2x128xf32>
    %81 = vector.broadcast %78 : f32 to vector<2x128xf32>
    %82 = arith.mulf %81, %80 : vector<2x128xf32>
    %83 = arith.addf %77, %82 : vector<2x128xf32>
    %c0_79 = arith.constant 0 : index
    %c2_80 = arith.constant 2 : index
    %c0_81 = arith.constant 0 : index
    %c0_82 = arith.constant 0 : index
    %84 = vector.load %arg5[%c0_79, %c2_80, %c0_81, %c0_82] : memref<1x3x2x128xf32, #tpu.memory_space<vmem>>, vector<1x1x2x128xf32>
    %85 = vector.shape_cast %84 : vector<1x1x2x128xf32> to vector<2x128xf32>
    %86 = vector.shape_cast %83 : vector<2x128xf32> to vector<1x1x2x128xf32>
    tpu.vector_store %arg5[%c0_79, %c2_80, %c0_81, %c0_82], %86 {strides = array<i32>} : memref<1x3x2x128xf32, #tpu.memory_space<vmem>>, vector<1x1x2x128xf32>,
    return
  }
  func.func @transform_0(%arg0: i32, %arg1: i32) -> (i32, i32) {
    %c0_i32 = arith.constant 0 : i32
    %c0_i32_0 = arith.constant 0 : i32
    %c0_i32_1 = arith.constant 0 : i32
    return %c0_i32, %c0_i32_0 : i32, i32
  }
  func.func @transform_1(%arg0: i32, %arg1: i32) -> i32 {
    %c0_i32 = arith.constant 0 : i32
    %c0_i32_0 = arith.constant 0 : i32
    return %c0_i32 : i32
  }
  func.func @transform_2(%arg0: i32, %arg1: i32) -> (i32, i32, i32, i32) {
    %c0_i32 = arith.constant 0 : i32
    %c0_i32_0 = arith.constant 0 : i32
    %c0_i32_1 = arith.constant 0 : i32
    return %arg0, %c0_i32, %arg1, %c0_i32_0 : i32, i32, i32, i32
  }
  func.func @transform_3(%arg0: i32, %arg1: i32) -> (i32, i32, i32, i32) {
    %c0_i32 = arith.constant 0 : i32
    %c0_i32_0 = arith.constant 0 : i32
    %c0_i32_1 = arith.constant 0 : i32
    return %arg0, %c0_i32, %arg1, %c0_i32_0 : i32, i32, i32, i32
  }
}

</mosaic_0001>

<bundles_post_ra>
// kernel: tpu_custom_call.1
= control target key start
LH: loop header
LB: loop body
LE: loop exit
PB: predicated region body
PF: predicated region fallthrough
CT: control target
= control target key end

     0   :  { %8 = vsyncpa [#allocation5], 0  ;;  %s1000_s0 = inlined_call_operand.hbm [shape: f32[3,4], index: 0, kind: input, shape index: {}]   ;;  %s1001_s1 = inlined_call_operand.vmem [shape: f32[3], index: 1, kind: input, shape index: {}]   ;;  %s1002_s2 = inlined_call_operand.hbm [shape: f32[2,4,2,128], index: 2, kind: input, shape index: {}]   ;;  %s1003_s3 = inlined_call_operand.hbm [shape: f32[2,3,2,128], index: 3, kind: output, shape index: {}]  }
   0x1   :  { %9 = vsyncpa [#allocation6], 0 }
   0x2   :  { %10 = vsyncpa [#allocation3], 0 }
   0x3   :  { %12 = vsyncpa [#allocation3 + $0x1], 0 }
   0x4   :  { %13 = vsyncpa [#allocation4], 0 }
   0x5   :  { %15 = vsyncpa [#allocation4 + $0x1], 0  ;;  %s737_s12 = smov 0   ;;  %s739_s13 = smov 0  }
   0x6   :  { %s741_s14 = smov 0   ;;  %s743_s15 = smov 0  }
   0x7   :  { %s745_s16 = smov 0   ;;  %s747_s17 = smov 0  }
   0x8 LB: > { %s429_s18 = sadd.s32 4294967295, %s707_s17   ;;  %s430_s19 = sadd.s32 4294967294, %s707_s17   ;;  %s707_s17 = sphi %s747_s17, %s21_s17   ;;  %s703_s16 = sphi %s745_s16, %s1024_s16   ;;  %s699_s15 = sphi %s743_s15, %s1023_s15   ;;  %s695_s14 = sphi %s741_s14, %s1022_s14   ;;  %s691_s13 = sphi %s739_s13, %s1021_s13   ;;  %s687_s12 = sphi %s737_s12, %s1020_s12  }
   0x9   : > { %s84_s20 = sadd.s32 1, %s695_s14  ;;  %p91_p0 = scmp.ne.s32.totalorder %s695_s14, %s691_s13 }
   0xa   : > { %p92_p1 = scmp.eq.s32.totalorder %s707_s17, 0  ;;  %p97_p2 = scmp.ne.s32.totalorder %s691_s13, %s687_s12 }
   0xb   : > { %p775_p3 = scmp.eq.s32.totalorder %s429_s18, 0  ;;  %p123_p4 = scmp.eq.s32.totalorder %s429_s18, 1 }
   0xc   : > { %p93_p5 = por %p92_p1, %p91_p0  ;;  %p129_p6 = scmp.eq.s32.totalorder %s430_s19, 1 }
   0xd   : > { %s1008_s21 = scalar_select %p775_p3, 1, 0 }
   0xe   : > { %p781_p7 = por %p775_p3, %p97_p2  ;;  %p785_p8 = por %p123_p4, %p91_p0 }
   0xf   : > { %p789_p9 = por %p129_p6, %p97_p2  ;;  %p431_p10 = scmp.ge.s32.totalorder %s707_s17, 1 }
  0x10   : > { %s1009_s22 = scalar_select %p781_p7, 1, 0 }
  0x11   : > { %s1010_s23 = scalar_select %p785_p8, 1, 0 }
  0x12   : > { %s1011_s24 = scalar_select %p789_p9, 1, 0 }
  0x13   : > { %p136_p11 = scmp.lt.s32.totalorder %s707_s17, 3  ;;  %p501_p1 = scmp.lt.s32.totalorder %s707_s17, 2 }
  0x14   : > { %s158_s28 = sshll.u32 %s1001_s1, 4  ;;  %s169_s4 = sand.u32 1, %s695_s14   ;;  %s159_s28 = int_to_ptr.vmem [resolvable:$true] %s158_s28 }
  0x15   : > { %p796_p13 = pnand %p431_p10, %p136_p11  ;;  %p806_p4 = pnand %p501_p1, %p93_p5 }
  0x16   : > { %s33_s5 = sadd.s32 1, %s703_s16  ;;  %s559_s8 = scalar_lea.hbm %s1000_s0, 64 }
  0x17   : > { %p484_p0 = pneg %p796_p13  ;;  %p560_p5 = scmp.ne.s32.totalorder %s1000_s0, %s559_s8 }
  0x18   : > { %p566_p1 = scmp.lt.u32.totalorder %s559_s8, %s1000_s0 }
  0x19   : > { %p812_p2 = pnand %p484_p0, %p775_p3 }
  0x1b   : > { %p561_p6 = pneg %p812_p2 }
  0x1d   : > { %p562_p10 = pnand %p561_p6, %p560_p5 }
  0x1f   : > { %p563_p11 = pneg %p562_p10 }
  0x21   : > { %p568_p0 = pnand %p566_p1, %p563_p11 }
  0x23   : > { %571 = shalt.err (!%p568_p0)
}
  0x24   : > { %s709_s19 = smov [#allocation2]   ;;  %s572_s6 = scalar_lea.vmem %s159_s28, 16 }
  0x25   : > { %487 = dma.hbm_to_smem (!%p812_p2), %s1000_s0, 64, %s709_s19, [#allocation5]  }
  0x26   : > { %p573_p12 = scmp.ne.s32.totalorder %s159_s28, %s572_s6  ;;  %p580_p7 = scmp.lt.s32.totalorder %s159_s28, %s159_s28 }
  0x27   : > { %p581_p5 = scmp.lt.s32.totalorder %s572_s6, %s572_s6 }
  0x28   : > { %p575_p9 = pnand %p573_p12, %p561_p6 }
  0x29   : > { %p582_p10 = por %p581_p5, %p580_p7 }
  0x2a   : > { %p576_p8 = pneg %p575_p9 }
  0x2c   : > { %p583_p3 = pnand %p582_p10, %p576_p8 }
  0x2e   : > { %586 = shalt.err (!%p583_p3)
}
  0x2f   : > { %s710_s7 = smov [#allocation7]   ;;  %p35_p11 = scmp.ge.s32.totalorder %s33_s5, 2 }
  0x30   : > { %490 = dma.vmem_to_smem (!%p812_p2), %s159_s28, 16, %s710_s7, [#allocation6]  }
  0x31   : > { %s435_s8 = sshll.u32 %s169_s4, 3  ;;  %s469_s9 = sshll.u32 %s703_s16, 7 }
  0x32   : > { %s1026_s5 = smov (%p35_p11, %s33_s5), 0  ;;  %s844_s30 = scalar_lea.hbm %s1002_s2, %s469_s9 }
  0x33   : > { %s79_s18 = ssub.s32 %s703_s16, %s1026_s5  ;;  %s173_s19 = scalar_lea.vmem [#allocation8], %s435_s8 }
  0x34   : > { %s181_s28 = sshll.u32 %s173_s19, 4  ;;  %p82_p3 = scmp.eq.s32.totalorder %s79_s18, 0  ;;  %s848_s28 = int_to_ptr.vmem [resolvable:$true] %s181_s28 }
  0x35   : > { %s857_s27 = scalar_lea.sflag [#allocation3], %s169_s4  ;;  %s587_s6 = scalar_lea.hbm %s844_s30, 128 }
  0x36   : > { %s853_s26 = scalar_select %p82_p3, %s695_s14, %s84_s20  }
  0x37   : > { %p588_p7 = scmp.ne.s32.totalorder %s844_s30, %s587_s6  ;;  %p589_p8 = pneg %p806_p4 }
  0x38   : > { %s592_s9 = scalar_lea.hbm %s1002_s2, 256  ;;  %p593_p2 = scmp.lt.u32.totalorder %s844_s30, %s1002_s2 }
  0x39   : > { %p590_p9 = pnand %p589_p8, %p588_p7  ;;  %p594_p6 = scmp.lt.u32.totalorder %s592_s9, %s587_s6 }
  0x3a   : > { %p596_p0 = scmp.lt.u32.totalorder %s587_s6, %s844_s30 }
  0x3b   : > { %p591_p12 = pneg %p590_p9  ;;  %p595_p1 = por %p594_p6, %p593_p2 }
  0x3d   : > { %p597_p5 = por %p596_p0, %p595_p1 }
  0x3f   : > { %p598_p10 = pnand %p597_p5, %p591_p12 }
  0x41   : > { %601 = shalt.err (!%p598_p10)
}
  0x42   : > { %s602_s20 = scalar_lea.vmem %s848_s28, 128  ;;  %s711_s4 = smov [#allocation8]  }
  0x43   : > { %p603_p11 = scmp.ne.s32.totalorder %s848_s28, %s602_s20  ;;  %s607_s18 = sshll.u32 %s711_s4, 4  ;;  %s608_s18 = int_to_ptr.vmem [resolvable:$false] %s607_s18 }
  0x44   : > { %s609_s19 = scalar_lea.vmem %s608_s18, 256  ;;  %p610_p9 = scmp.lt.s32.totalorder %s848_s28, %s608_s18 }
  0x45   : > { %p605_p3 = pnand %p603_p11, %p589_p8  ;;  %p611_p2 = scmp.lt.s32.totalorder %s609_s19, %s602_s20 }
  0x47   : > { %p606_p7 = pneg %p605_p3  ;;  %p612_p6 = por %p611_p2, %p610_p9 }
  0x49   : > { %p613_p1 = pnand %p612_p6, %p606_p7 }
  0x4b   : > { %616 = shalt.err (!%p613_p1)
}
  0x4c   : > { %s712_s6 = smov 32   ;;  %s713_s7 = smov 2  }
  0x4d   : > { %494 = dma.hbm_to_vmem [thread:$0]  (!%p806_p4), %s844_s30, 128, %s848_s28, %s857_s27, %s712_s6, %s712_s6, %s713_s7  }
  0x4e   : > { %193 = sbr.rel (%p796_p13) target bundleno = 131 (0x83), region = 32  ;;  %p1015_p8 = scmp.ne.s32.totalorder (!%p796_p13), %s1008_s21, 0 }
  0x55   : > { %670 = dma.done.wait (%p1015_p8), [#allocation5], 64  }
  0x56   : > { %672 = vsyncadd (%p1015_p8), [#allocation5], 4294967232 }
  0x57   : > { %674 = dma.done.wait (%p1015_p8), [#allocation6], 16  }
  0x58   : > { %676 = vsyncadd (%p1015_p8), [#allocation6], 4294967280  ;;  %s896_s8 = sand.u32 1, %s691_s13   ;;  %p1016_p13 = scmp.ne.s32.totalorder %s1009_s22, 0 }
  0x59   : > { %s441_s25 = sshll.u32 %s896_s8, 3  ;;  %s204_s29 = scalar_lea.sflag [#allocation3], %s896_s8 }
  0x5a   : > { %s900_s30 = scalar_lea.vmem [#allocation8], %s441_s25 }
  0x5b   : > { %678 = dma.done.wait (%p1016_p13), %s204_s29, 128  }
  0x5c   : > { %680 = vsyncadd (%p1016_p13), %s204_s29, 4294967168 }
  0x5d   : > { %212 = sfence }
  0x5e   : > { %s231_s28 = sld [smem:[#allocation7]]  ;;  %s442_s27 = sld [smem:[#allocation2 + $0x1]]  ;;  %v234_v0 = vld [vmem:[%s900_s30] sm:$0x3]  ;;  %v443_v1 = vld [vmem:[%s900_s30 + $0x2] sm:$0x3] }
  0x5f   : > { %s233_s21 = sld [smem:[#allocation2]]  ;;  %s444_s9 = sld [smem:[#allocation2 + $0x2]]  ;;  %v445_v5 = vld [vmem:[%s900_s30 + $0x4] sm:$0x3]  ;;  %v447_v9 = vld [vmem:[%s900_s30 + $0x6] sm:$0x3] }
  0x60   : > { %s446_s10 = sld [smem:[#allocation2 + $0x3]]  ;;  %s907_s11 = sld [smem:[#allocation7 + $0x1]]  ;;  %v260_v11 = vld [vmem:[%s900_s30] sm:$0x3]  ;;  %v451_v12 = vld [vmem:[%s900_s30 + $0x2] sm:$0x3] }
  0x61   : > { %s449_s20 = sld [smem:[#allocation2 + $0x80]]  ;;  %s450_s4 = sld [smem:[#allocation2 + $0x81]]  ;;  %v453_v15 = vld [vmem:[%s900_s30 + $0x4] sm:$0x3]  ;;  %v284_v20 = vld [vmem:[%s900_s30] sm:$0x3] }
  0x62   : > { %s910_s18 = sld [smem:[#allocation2 + $0x82]]  ;;  %s912_s22 = sld [smem:[#allocation2 + $0x83]]  ;;  %v455_v25 = vld [vmem:[%s900_s30 + $0x6] sm:$0x3]  ;;  %v460_v29 = vld [vmem:[%s900_s30 + $0x2] sm:$0x3] }
  0x63   : > { %s915_s19 = sld [smem:[#allocation7 + $0x2]]  ;;  %s917_s6 = sld [smem:[#allocation2 + $0x100]]  ;;  %v462_v34 = vld [vmem:[%s900_s30 + $0x4] sm:$0x3]  ;;  %v464_v38 = vld [vmem:[%s900_s30 + $0x6] sm:$0x3] }
  0x64   : > { %v232_v2 = vstv %s231_s28  ;;  %v241_v4 = vstv %s442_s27  ;;  %s920_s7 = sld [smem:[#allocation2 + $0x101]]  ;;  %s922_s25 = sld [smem:[#allocation2 + $0x102]] }
  0x65   : > { %v235_v3 = vstv %s233_s21  ;;  %v242_v7 = vmul.f32 %v443_v1, %v241_v4  ;;  %v247_v8 = vstv %s444_s9  ;;  %s926_s29 = sld [smem:[#allocation2 + $0x103]]  ;;  %s470_s28 = smul.u32 6, %s896_s8 }
  0x66   : > { %v236_v6 = vmul.f32 %v235_v3, %v234_v0  ;;  %v253_v10 = vstv %s446_s10  ;;  %v248_v14 = vmul.f32 %v445_v5, %v247_v8  ;;  %v258_v17 = vstv %s907_s11  ;;  %s471_s9 = smul.u32 96, %s699_s15  ;;  %p1017_p12 = scmp.ne.s32.totalorder %s1010_s23, 0 }
  0x67   : > { %v254_v16 = vmul.f32 %v447_v9, %v253_v10  ;;  %v261_v18 = vstv %s449_s20  ;;  %v266_v19 = vstv %s450_s4  ;;  %s230_s21 = scalar_lea.vmem [#allocation9], %s470_s28  ;;  %s306_s20 = scalar_lea.sflag [#allocation4], %s896_s8 }
  0x68   : > { %v237_v13 = vadd.f32 %v236_v6, %v232_v2  ;;  %v262_v22 = vmul.f32 %v261_v18, %v260_v11  ;;  %v267_v23 = vmul.f32 %v451_v12, %v266_v19  ;;  %v271_v24 = vstv %s910_s18  ;;  %s320_s27 = sshll.u32 %s230_s21, 4  ;;  %s951_s11 = scalar_lea.hbm %s1003_s3, %s471_s9  ;;  %s946_s27 = int_to_ptr.vmem [resolvable:$true] %s320_s27 }
  0x69   : > { %v276_v26 = vstv %s912_s22  ;;  %v282_v27 = vstv %s915_s19  ;;  %v285_v28 = vstv %s917_s6  ;;  %v272_v32 = vmul.f32 %v453_v15, %v271_v24  ;;  %s617_s4 = scalar_lea.vmem %s946_s27, 96  ;;  %s714_s15 = smov [#allocation9]  }
  0x6a   : > { %v243_v21 = vadd.f32 %v242_v7, %v237_v13  ;;  %v263_v31 = vadd.f32 %v262_v22, %v258_v17  ;;  %v286_v33 = vmul.f32 %v285_v28, %v284_v20  ;;  %v277_v35 = vmul.f32 %v455_v25, %v276_v26  ;;  %p618_p4 = scmp.ne.s32.totalorder %s946_s27, %s617_s4  ;;  %s621_s18 = sshll.u32 %s714_s15, 4  ;;  %s622_s18 = int_to_ptr.vmem [resolvable:$false] %s621_s18 }
  0x6b   : > { %v290_v36 = vstv %s920_s7  ;;  %v295_v37 = vstv %s922_s25  ;;  %v300_v39 = vstv %s926_s29  ;;  %s623_s22 = scalar_lea.vmem %s622_s18, 192  ;;  %p624_p10 = scmp.lt.s32.totalorder %s946_s27, %s622_s18 }
  0x6c   : > { %v249_v30 = vadd.f32 %v248_v14, %v243_v21  ;;  %v268_v41 = vadd.f32 %v267_v23, %v263_v31  ;;  %v287_v42 = vadd.f32 %v286_v33, %v282_v27  ;;  %v291_v43 = vmul.f32 %v460_v29, %v290_v36  ;;  %p619_p0 = pnand %p618_p4, %p1017_p12  ;;  %p625_p11 = scmp.lt.s32.totalorder %s623_s22, %s617_s4 }
  0x6d   : > { %v296_v44 = vmul.f32 %v462_v34, %v295_v37  ;;  %v301_v47 = vmul.f32 %v464_v38, %v300_v39 }
  0x6e   : > { %v255_v40 = vadd.f32 %v254_v16, %v249_v30  ;;  %v273_v45 = vadd.f32 %v272_v32, %v268_v41  ;;  %v292_v46 = vadd.f32 %v291_v43, %v287_v42  ;;  %p620_p5 = pneg %p619_p0  ;;  %p626_p3 = por %p625_p11, %p624_p10 }
  0x70   : > { %256 = vst [vmem:[%s230_s21] sm:$0x3] %v255_v40  ;;  %v278_v48 = vadd.f32 %v277_v35, %v273_v45  ;;  %v297_v49 = vadd.f32 %v296_v44, %v292_v46  ;;  %p627_p7 = pnand %p626_p3, %p620_p5 }
  0x72   : > { %456 = vst [vmem:[%s230_s21 + $0x2] sm:$0x3] %v278_v48  ;;  %v302_v50 = vadd.f32 %v301_v47, %v297_v49 }
  0x74   : > { %465 = vst [vmem:[%s230_s21 + $0x4] sm:$0x3] %v302_v50 }
  0x75   : > { %630 = shalt.err (!%p627_p7)
}
  0x76   : > { %s631_s19 = scalar_lea.hbm %s951_s11, 96  ;;  %s635_s25 = scalar_lea.hbm %s1003_s3, 192 }
  0x77   : > { %p632_p9 = scmp.ne.s32.totalorder %s951_s11, %s631_s19  ;;  %p636_p1 = scmp.lt.u32.totalorder %s951_s11, %s1003_s3 }
  0x78   : > { %p637_p8 = scmp.lt.u32.totalorder %s635_s25, %s631_s19  ;;  %p639_p4 = scmp.lt.u32.totalorder %s631_s19, %s951_s11 }
  0x79   : > { %p633_p2 = pnand %p632_p9, %p1017_p12 }
  0x7a   : > { %p638_p13 = por %p637_p8, %p636_p1 }
  0x7b   : > { %p634_p6 = pneg %p633_p2 }
  0x7c   : > { %p640_p0 = por %p639_p4, %p638_p13 }
  0x7e   : > { %p641_p5 = pnand %p640_p0, %p634_p6 }
  0x80   : > { %644 = shalt.err (!%p641_p5)
}
  0x81   : > { %s715_s21 = smov 32   ;;  %s716_s9 = smov 2  }
  0x82   : > { %482 = dma.vmem_to_hbm [thread:$0]  (%p1017_p12), %s946_s27, 96, %s951_s11, %s306_s20, %s715_s21, %s715_s21, %s716_s9  }
  0x83 PF: > { %s335_s30 = sand.u32 1, %s687_s12   ;;  %p1018_p10 = scmp.ne.s32.totalorder %s1011_s24, 0 }
  0x84   : > { %p1019_p11 = scmp.ge.s32.totalorder %s707_s17, 2  ;;  %s336_s10 = scalar_lea.sflag [#allocation4], %s335_s30 }
  0x86   : > { %p496_p3 = pnand %p1019_p11, %p1018_p10 }
  0x88   : > { %682 = dma.done.wait (!%p496_p3), %s336_s10, 96  }
  0x89   : > { %684 = vsyncadd (!%p496_p3), %s336_s10, 4294967200  ;;  %s21_s17 = sadd.s32 1, %s707_s17   ;;  %s1020_s12 = smov %s691_s13 }
  0x8a   : > { %p18_p7 = scmp.ge.s32.totalorder %s21_s17, 4   ;;  %s1021_s13 = smov %s695_s14 }
  0x8b   : > { %s1022_s14 = smov %s853_s26  ;;  %s1023_s15 = smov %s703_s16 }
  0x8c   : > { %s1024_s16 = smov %s1026_s5  ;;  %20 = sbr.rel (!%p18_p7) target bundleno = 8 (0x8), region = 92 }
  0x93   :  { %341 = vsyncpa [#allocation3], 1 }
  0x94   :  { %343 = vsyncpa [#allocation3 + $0x1], 1 }
  0x95   :  { %344 = vsyncpa [#allocation4], 1 }
  0x96   :  { %346 = vsyncpa [#allocation4 + $0x1], 1 }
  0x97   :  { %347 = vsyncpa [#allocation5], 1 }
  0x98   :  { %349 = vsyncpa [#allocation5 + $0x1], 1 }
  0x99   :  { %350 = vsyncpa [#allocation6], 1 }
  0x9a   :  { %352 = vsyncpa [#allocation6 + $0x1], 1 }

</bundles_post_ra>
